<compile_context>
chip_gen: v7x
topology: tpu7x:2x2x1
jax: 0.10.0
libtpu: 0.0.40
codegen_flags: <defaults>
</compile_context>

<pallas_src>
import functools

import jax
import jax.numpy as jnp
from jax.experimental import pallas as pl
from jax.experimental.pallas import tpu as pltpu

LANE = 128
SUBLANE = 8


def _round_up(v, m):
    return ((v + m - 1) // m) * m


def _cdiv(a, b):
    return -(-a // b)


def _vmem_budget():
    try:
        cap = int(pltpu.get_tpu_info().vmem_capacity_bytes)
    except Exception:
        cap = 64 << 20          # assume v7x (smallest per-TC VMEM) if query fails
    return cap * 3 // 4         # leave headroom for Mosaic internal scratch


def _pick_tb(B, f_pad, vmem_budget):
    """Batch-tile size: >=2 grid steps when possible (v7x megacore), minimal
    padding waste, M multiples of 256 preferred (v6e/v7x MXU), VMEM-capped."""
    row_bytes = f_pad * (2 + 4)                       # bf16 x row + f32 out row
    tb_cap = max(SUBLANE,
                 ((vmem_budget // 3) // (2 * row_bytes)) // SUBLANE * SUBLANE)
    tb_cap = min(tb_cap, 1024)
    if B <= 128:
        return min(_round_up(B, SUBLANE), tb_cap)
    cands = {128, 256, 384, 512, 768, 1024,
             _round_up(_cdiv(B, 2), SUBLANE),
             _round_up(_cdiv(B, 4), SUBLANE)}
    best_key, best_tb = None, None
    for tb in sorted(cands):
        if tb < SUBLANE or tb > tb_cap:
            continue
        bpad = _round_up(B, tb)
        ntiles = bpad // tb
        key = (0 if ntiles >= 2 else 1,      # feed both v7x TensorCores
               bpad - B,                     # wasted (padded) batch rows
               0 if tb % 256 == 0 else 1,    # fill 256-wide MXU M dim (v6e/v7x)
               -tb)                          # then fewer per-step overheads
        if best_key is None or key < best_key:
            best_key, best_tb = key, tb
    if best_tb is None:
        best_tb = min(_round_up(B, SUBLANE), tb_cap)
    return best_tb


# --------------------------------------------------------------------------
# Kernels
# --------------------------------------------------------------------------
def mlp_resident_kernel(x_ref, *refs, n_layers, h_pad, f_pad):
    """All weights VMEM-resident.  refs = (w_in, w_h0..w_h{L-1}, w_out, biases, out)."""
    out_ref = refs[-1]
    b_all = refs[-2][...]                      # (n_layers + 2, W_pad) f32
    w_refs = refs[:-2]

    x = x_ref[...]                             # (TB, F_pad) bf16
    h = jnp.dot(x, w_refs[0][...], preferred_element_type=jnp.float32)
    h = h + b_all[0:1, :h_pad]
    for i in range(n_layers):
        # Dropout(p=0.2) is the identity at inference; then ReLU -> Linear.
        h = jnp.maximum(h, 0.0).astype(jnp.bfloat16)
        h = jnp.dot(h, w_refs[1 + i][...], preferred_element_type=jnp.float32)
        h = h + b_all[1 + i:2 + i, :h_pad]
    out = jnp.dot(h.astype(jnp.bfloat16), w_refs[-1][...],
                  preferred_element_type=jnp.float32)
    out = out + b_all[n_layers + 1:n_layers + 2, :f_pad]
    out_ref[...] = out.astype(out_ref.dtype)


def mlp_streaming_kernel(x_ref, w_in_ref, w_hid_hbm, w_out_ref, b_ref, out_ref,
                         wbuf, sem, *, n_layers, h_pad, f_pad):
    """Hidden-layer weights streamed HBM->VMEM with manual double-buffered DMAs
    (bounds weight VMEM to ~2 layers regardless of depth)."""
    b_all = b_ref[...]                         # (n_layers + 2, W_pad) f32

    # Prefetch layer-0 weights while the input matmul runs.
    pltpu.make_async_copy(w_hid_hbm.at[0], wbuf.at[0], sem.at[0]).start()

    x = x_ref[...]                             # (TB, F_pad) bf16
    h = jnp.dot(x, w_in_ref[...], preferred_element_type=jnp.float32)
    h = h + b_all[0:1, :h_pad]

    for i in range(n_layers):
        slot = i % 2
        pltpu.make_async_copy(w_hid_hbm.at[i], wbuf.at[slot], sem.at[slot]).wait()
        if i + 1 < n_layers:                   # prefetch next layer into other slot
            pltpu.make_async_copy(w_hid_hbm.at[i + 1], wbuf.at[1 - slot],
                                  sem.at[1 - slot]).start()
        h = jnp.maximum(h, 0.0).astype(jnp.bfloat16)
        h = jnp.dot(h, wbuf[slot], preferred_element_type=jnp.float32)
        h = h + b_all[1 + i:2 + i, :h_pad]

    out = jnp.dot(h.astype(jnp.bfloat16), w_out_ref[...],
                  preferred_element_type=jnp.float32)
    out = out + b_all[n_layers + 1:n_layers + 2, :f_pad]
    out_ref[...] = out.astype(out_ref.dtype)


# --------------------------------------------------------------------------
# Wrapper
# --------------------------------------------------------------------------
def mlp_predictor_forward(x, params, n_layers, *, force_streaming=False):
    """x: (B, n_features) f32.  params: [(W, b)] with W in PyTorch (out, in) layout."""
    B, n_features = x.shape
    n_hidden = params[0][0].shape[0]
    assert len(params) == n_layers + 2

    F_pad = _round_up(n_features, LANE)
    H_pad = _round_up(n_hidden, LANE)
    W_pad = max(F_pad, H_pad)
    n_lin = n_layers + 2

    vmem_budget = _vmem_budget()
    TB = _pick_tb(B, F_pad, vmem_budget)
    B_pad = _round_up(B, TB)
    grid = (B_pad // TB,)

    # bf16 input tiles: halves x HBM<->VMEM traffic (kernel computes in bf16 anyway).
    x_p = jnp.zeros((B_pad, F_pad), jnp.bfloat16).at[:B, :n_features].set(
        x.astype(jnp.bfloat16))

    # (out, in) -> (in, out), zero-pad to 128 lanes, bf16 for the MXU.
    def prep_w(W, din_p, dout_p):
        W = jnp.asarray(W, jnp.float32)
        dout, din = W.shape
        return jnp.zeros((din_p, dout_p), jnp.bfloat16).at[:din, :dout].set(
            W.T.astype(jnp.bfloat16))

    w_in = prep_w(params[0][0], F_pad, H_pad)
    w_hidden = [prep_w(params[1 + i][0], H_pad, H_pad) for i in range(n_layers)]
    w_out = prep_w(params[-1][0], H_pad, F_pad)

    # All biases stacked into a single f32 block (avoids 8-sublane padding per bias).
    biases = jnp.zeros((n_lin, W_pad), jnp.float32)
    for i, (_, b) in enumerate(params):
        b = jnp.asarray(b, jnp.float32)
        biases = biases.at[i, :b.shape[0]].set(b)

    # ---- VMEM accounting ---------------------------------------------------
    io_bytes = 2 * TB * F_pad * (2 + 4)             # double-buffered bf16 x + f32 out
    act_bytes = 6 * TB * max(H_pad, F_pad) * 4      # f32 matmul outputs / temporaries
    bias_bytes = _round_up(n_lin, SUBLANE) * W_pad * 4
    hid_w_bytes = n_layers * H_pad * H_pad * 2
    edge_w_bytes = (int(w_in.size) + int(w_out.size)) * 2
    margin = 2 << 20

    resident_need = (edge_w_bytes + hid_w_bytes + bias_bytes
                     + io_bytes + act_bytes + margin)
    use_streaming = n_layers >= 1 and (force_streaming or resident_need > vmem_budget)

    flops = 2 * B_pad * (F_pad * H_pad + n_layers * H_pad * H_pad + H_pad * F_pad)
    bytes_accessed = (B_pad * F_pad * (2 + 4) + edge_w_bytes + bias_bytes
                      + hid_w_bytes * (grid[0] if use_streaming else 1))
    cost = pl.CostEstimate(flops=int(flops), transcendentals=0,
                           bytes_accessed=int(bytes_accessed))

    x_spec = pl.BlockSpec((TB, F_pad), lambda i: (i, 0))
    out_spec = pl.BlockSpec((TB, F_pad), lambda i: (i, 0))
    out_shape = jax.ShapeDtypeStruct((B_pad, F_pad), jnp.float32)

    def const_spec(shape, use_buffered):
        # Invariant across the batch grid: constant block index keeps it VMEM
        # resident; Buffered(1) avoids allocating a useless second buffer.
        if use_buffered:
            return pl.BlockSpec(shape, lambda i: (0, 0), pipeline_mode=pl.Buffered(1))
        return pl.BlockSpec(shape, lambda i: (0, 0))

    def call_resident(use_buffered):
        wmult = 1 if use_buffered else 2
        need = ((edge_w_bytes + hid_w_bytes + bias_bytes) * wmult
                + io_bytes + act_bytes + margin)
        vmem_limit = int(min(max(need, 8 << 20), vmem_budget))
        flat = [w_in] + w_hidden + [w_out, biases]
        in_specs = [x_spec] + [const_spec(a.shape, use_buffered) for a in flat]
        kernel = functools.partial(mlp_resident_kernel, n_layers=n_layers,
                                   h_pad=H_pad, f_pad=F_pad)
        return pl.pallas_call(
            kernel, out_shape=out_shape, grid=grid,
            in_specs=in_specs, out_specs=out_spec,
            compiler_params=pltpu.CompilerParams(
                dimension_semantics=("parallel",),
                vmem_limit_bytes=vmem_limit),
            cost_estimate=cost,
        )(x_p, *flat)

    def call_streaming(use_buffered):
        wmult = 1 if use_buffered else 2
        wbuf_bytes = 2 * H_pad * H_pad * 2          # double-buffered one-layer weight
        need = ((edge_w_bytes + bias_bytes) * wmult + wbuf_bytes
                + io_bytes + act_bytes + margin)
        vmem_limit = int(min(max(need, 8 << 20), vmem_budget))
        w_stack = jnp.stack(w_hidden, axis=0)       # (n_layers, H_pad, H_pad), stays in HBM
        in_specs = [x_spec,
                    const_spec(w_in.shape, use_buffered),
                    pl.BlockSpec(memory_space=pl.ANY),
                    const_spec(w_out.shape, use_buffered),
                    const_spec(biases.shape, use_buffered)]
        kernel = functools.partial(mlp_streaming_kernel, n_layers=n_layers,
                                   h_pad=H_pad, f_pad=F_pad)
        return pl.pallas_call(
            kernel, out_shape=out_shape, grid=grid,
            in_specs=in_specs, out_specs=out_spec,
            scratch_shapes=[pltpu.VMEM((2, H_pad, H_pad), jnp.bfloat16),
                            pltpu.SemaphoreType.DMA((2,))],
            compiler_params=pltpu.CompilerParams(
                dimension_semantics=("parallel",),
                vmem_limit_bytes=vmem_limit),
            cost_estimate=cost,
        )(x_p, w_in, w_stack, w_out, biases)

    caller = call_streaming if use_streaming else call_resident
    try:
        out_p = caller(True)
    except Exception:
        # Some JAX versions may reject pipeline_mode=Buffered(1); fall back to defaults.
        out_p = caller(False)

    return out_p[:B, :n_features].astype(x.dtype)


# --------------------------------------------------------------------------
# Reference / init
# --------------------------------------------------------------------------
def init_params(key, n_features, n_hidden, n_layers):
    """Deterministic init of the same parameter shapes as the PyTorch module."""
    params = []
    dims = [(n_features, n_hidden)]
    dims += [(n_hidden, n_hidden)] * n_layers
    dims += [(n_hidden, n_features)]
    for (fan_in, fan_out) in dims:
        key, kw, kb = jax.random.split(key, 3)
        bound = 1.0 / jnp.sqrt(fan_in)
        W = jax.random.uniform(kw, (fan_out, fan_in), jnp.float32, -bound, bound)
        b = jax.random.uniform(kb, (fan_out,), jnp.float32, -bound, bound)
        params.append((W, b))
    return params


def reference_forward(x, params, n_layers):
    """Pure-JAX f32 reference for correctness check."""
    W0, b0 = params[0]
    h = x @ W0.T + b0
    for i in range(n_layers):
        Wi, bi = params[1 + i]
        h = jnp.maximum(h, 0.0)
        h = h @ Wi.T + bi
    Wo, bo = params[-1]
    return h @ Wo.T + bo


if __name__ == "__main__":
    n_features = 16
    n_hidden = 32
    n_layers = 2

    key = jax.random.PRNGKey(0)
    key, kp = jax.random.split(key)
    params = init_params(kp, n_features, n_hidden, n_layers)

    # 1) Small batch -> single-tile, weight-resident path.
    key, kx = jax.random.split(key)
    x_small = jax.random.normal(kx, (8, n_features), jnp.float32)
    out = jax.block_until_ready(mlp_predictor_forward(x_small, params, n_layers))
    ref = reference_forward(x_small, params, n_layers)
    assert out.shape == (8, n_features)
    # bf16 matmuls with f32 accumulation -> loosened tolerance vs. f32 reference.
    assert jnp.allclose(out, ref, atol=3e-2, rtol=3e-2), "resident path mismatch"

    # 2) Larger batch -> multi-step grid (exercises pipelining / megacore split).
    key, kx = jax.random.split(key)
    x_big = jax.random.normal(kx, (260, n_features), jnp.float32)
    out_b = jax.block_until_ready(mlp_predictor_forward(x_big, params, n_layers))
    ref_b = reference_forward(x_big, params, n_layers)
    assert jnp.allclose(out_b, ref_b, atol=3e-2, rtol=3e-2), "multi-tile path mismatch"

    # 3) Forced layer-streaming path (HBM-resident hidden weights, manual DMA).
    out_s = jax.block_until_ready(
        mlp_predictor_forward(x_small, params, n_layers, force_streaming=True))
    assert jnp.allclose(out_s, ref, atol=3e-2, rtol=3e-2), "streaming path mismatch"

    print("KERNEL_OK")
</pallas_src>

<mosaic_0001>
module attributes {stable_mosaic.version = 11 : i64} {
  func.func @mlp_resident_kernel(%arg0: i32, %arg1: memref<8x128xbf16, #tpu.memory_space<vmem>>, %arg2: memref<128x128xbf16, #tpu.memory_space<vmem>>, %arg3: memref<128x128xbf16, #tpu.memory_space<vmem>>, %arg4: memref<128x128xbf16, #tpu.memory_space<vmem>>, %arg5: memref<128x128xbf16, #tpu.memory_space<vmem>>, %arg6: memref<4x128xf32, #tpu.memory_space<vmem>>, %arg7: memref<8x128xf32, #tpu.memory_space<vmem>>) attributes {dimension_semantics = [#tpu.dimension_semantics<parallel>], iteration_bounds = array<i64: 1>, scalar_prefetch = 0 : i64, scratch_operands = 0 : i64, tpu.core_type = #tpu.core_type<tc>, window_params = [{transform_indices = @transform_0, window_bounds = array<i64: 8, 128>}, {pipeline_mode = #tpu.pipeline_mode<synchronous>, transform_indices = @transform_1, window_bounds = array<i64: 128, 128>}, {pipeline_mode = #tpu.pipeline_mode<synchronous>, transform_indices = @transform_2, window_bounds = array<i64: 128, 128>}, {pipeline_mode = #tpu.pipeline_mode<synchronous>, transform_indices = @transform_3, window_bounds = array<i64: 128, 128>}, {pipeline_mode = #tpu.pipeline_mode<synchronous>, transform_indices = @transform_4, window_bounds = array<i64: 128, 128>}, {pipeline_mode = #tpu.pipeline_mode<synchronous>, transform_indices = @transform_5, window_bounds = array<i64: 4, 128>}, {transform_indices = @transform_6, window_bounds = array<i64: 8, 128>}]} {
    %c0 = arith.constant 0 : index
    %c0_0 = arith.constant 0 : index
    %0 = vector.load %arg6[%c0, %c0_0] : memref<4x128xf32, #tpu.memory_space<vmem>>, vector<4x128xf32>
    %c0_1 = arith.constant 0 : index
    %c0_2 = arith.constant 0 : index
    %1 = vector.load %arg1[%c0_1, %c0_2] : memref<8x128xbf16, #tpu.memory_space<vmem>>, vector<8x128xbf16>
    %c0_3 = arith.constant 0 : index
    %c0_4 = arith.constant 0 : index
    %2 = vector.load %arg2[%c0_3, %c0_4] : memref<128x128xbf16, #tpu.memory_space<vmem>>, vector<128x128xbf16>
    %cst = arith.constant dense<0.000000e+00> : vector<8x128xf32>
    %3 = tpu.matmul %1, %2, %cst {dimension_numbers = #tpu.dot_dimension_numbers<[1], [0], [0], [1], [0, 0, 1, 1], [], []>} : vector<8x128xbf16>, vector<128x128xbf16>, vector<8x128xf32> -> vector<8x128xf32>
    %4 = vector.extract_strided_slice %0 {offsets = [0, 0], sizes = [1, 128], strides = [1, 1]} : vector<4x128xf32> to vector<1x128xf32>
    %5 = vector.broadcast %4 : vector<1x128xf32> to vector<8x128xf32>
    %6 = arith.addf %3, %5 : vector<8x128xf32>
    %cst_5 = arith.constant 0.000000e+00 : f32
    %7 = vector.broadcast %cst_5 : f32 to vector<8x128xf32>
    %8 = arith.maximumf %6, %7 : vector<8x128xf32>
    %9 = arith.truncf %8 : vector<8x128xf32> to vector<8x128xbf16>
    %c0_6 = arith.constant 0 : index
    %c0_7 = arith.constant 0 : index
    %10 = vector.load %arg3[%c0_6, %c0_7] : memref<128x128xbf16, #tpu.memory_space<vmem>>, vector<128x128xbf16>
    %cst_8 = arith.constant dense<0.000000e+00> : vector<8x128xf32>
    %11 = tpu.matmul %9, %10, %cst_8 {dimension_numbers = #tpu.dot_dimension_numbers<[1], [0], [0], [1], [0, 0, 1, 1], [], []>} : vector<8x128xbf16>, vector<128x128xbf16>, vector<8x128xf32> -> vector<8x128xf32>
    %12 = vector.extract_strided_slice %0 {offsets = [1, 0], sizes = [1, 128], strides = [1, 1]} : vector<4x128xf32> to vector<1x128xf32>
    %13 = vector.broadcast %12 : vector<1x128xf32> to vector<8x128xf32>
    %14 = arith.addf %11, %13 : vector<8x128xf32>
    %cst_9 = arith.constant 0.000000e+00 : f32
    %15 = vector.broadcast %cst_9 : f32 to vector<8x128xf32>
    %16 = arith.maximumf %14, %15 : vector<8x128xf32>
    %17 = arith.truncf %16 : vector<8x128xf32> to vector<8x128xbf16>
    %c0_10 = arith.constant 0 : index
    %c0_11 = arith.constant 0 : index
    %18 = vector.load %arg4[%c0_10, %c0_11] : memref<128x128xbf16, #tpu.memory_space<vmem>>, vector<128x128xbf16>
    %cst_12 = arith.constant dense<0.000000e+00> : vector<8x128xf32>
    %19 = tpu.matmul %17, %18, %cst_12 {dimension_numbers = #tpu.dot_dimension_numbers<[1], [0], [0], [1], [0, 0, 1, 1], [], []>} : vector<8x128xbf16>, vector<128x128xbf16>, vector<8x128xf32> -> vector<8x128xf32>
    %20 = vector.extract_strided_slice %0 {offsets = [2, 0], sizes = [1, 128], strides = [1, 1]} : vector<4x128xf32> to vector<1x128xf32>
    %21 = vector.broadcast %20 : vector<1x128xf32> to vector<8x128xf32>
    %22 = arith.addf %19, %21 : vector<8x128xf32>
    %23 = arith.truncf %22 : vector<8x128xf32> to vector<8x128xbf16>
    %c0_13 = arith.constant 0 : index
    %c0_14 = arith.constant 0 : index
    %24 = vector.load %arg5[%c0_13, %c0_14] : memref<128x128xbf16, #tpu.memory_space<vmem>>, vector<128x128xbf16>
    %cst_15 = arith.constant dense<0.000000e+00> : vector<8x128xf32>
    %25 = tpu.matmul %23, %24, %cst_15 {dimension_numbers = #tpu.dot_dimension_numbers<[1], [0], [0], [1], [0, 0, 1, 1], [], []>} : vector<8x128xbf16>, vector<128x128xbf16>, vector<8x128xf32> -> vector<8x128xf32>
    %26 = vector.extract_strided_slice %0 {offsets = [3, 0], sizes = [1, 128], strides = [1, 1]} : vector<4x128xf32> to vector<1x128xf32>
    %27 = vector.broadcast %26 : vector<1x128xf32> to vector<8x128xf32>
    %28 = arith.addf %25, %27 : vector<8x128xf32>
    %c0_16 = arith.constant 0 : index
    %c0_17 = arith.constant 0 : index
    %29 = vector.load %arg7[%c0_16, %c0_17] : memref<8x128xf32, #tpu.memory_space<vmem>>, vector<8x128xf32>
    tpu.vector_store %arg7[%c0_16, %c0_17], %28 {strides = array<i32>} : memref<8x128xf32, #tpu.memory_space<vmem>>, vector<8x128xf32>,
    return
  }
  func.func @transform_0(%arg0: i32) -> (i32, i32) {
    %c0_i32 = arith.constant 0 : i32
    %c0_i32_0 = arith.constant 0 : i32
    return %arg0, %c0_i32 : i32, i32
  }
  func.func @transform_1(%arg0: i32) -> (i32, i32) {
    %c0_i32 = arith.constant 0 : i32
    %c0_i32_0 = arith.constant 0 : i32
    %c0_i32_1 = arith.constant 0 : i32
    return %c0_i32, %c0_i32_0 : i32, i32
  }
  func.func @transform_2(%arg0: i32) -> (i32, i32) {
    %c0_i32 = arith.constant 0 : i32
    %c0_i32_0 = arith.constant 0 : i32
    %c0_i32_1 = arith.constant 0 : i32
    return %c0_i32, %c0_i32_0 : i32, i32
  }
  func.func @transform_3(%arg0: i32) -> (i32, i32) {
    %c0_i32 = arith.constant 0 : i32
    %c0_i32_0 = arith.constant 0 : i32
    %c0_i32_1 = arith.constant 0 : i32
    return %c0_i32, %c0_i32_0 : i32, i32
  }
  func.func @transform_4(%arg0: i32) -> (i32, i32) {
    %c0_i32 = arith.constant 0 : i32
    %c0_i32_0 = arith.constant 0 : i32
    %c0_i32_1 = arith.constant 0 : i32
    return %c0_i32, %c0_i32_0 : i32, i32
  }
  func.func @transform_5(%arg0: i32) -> (i32, i32) {
    %c0_i32 = arith.constant 0 : i32
    %c0_i32_0 = arith.constant 0 : i32
    %c0_i32_1 = arith.constant 0 : i32
    return %c0_i32, %c0_i32_0 : i32, i32
  }
  func.func @transform_6(%arg0: i32) -> (i32, i32) {
    %c0_i32 = arith.constant 0 : i32
    %c0_i32_0 = arith.constant 0 : i32
    return %arg0, %c0_i32 : i32, i32
  }
}

module attributes {stable_mosaic.version = 11 : i64} {
  func.func @mlp_resident_kernel(%arg0: i32, %arg1: memref<8x128xbf16, #tpu.memory_space<vmem>>, %arg2: memref<128x128xbf16, #tpu.memory_space<vmem>>, %arg3: memref<128x128xbf16, #tpu.memory_space<vmem>>, %arg4: memref<128x128xbf16, #tpu.memory_space<vmem>>, %arg5: memref<128x128xbf16, #tpu.memory_space<vmem>>, %arg6: memref<4x128xf32, #tpu.memory_space<vmem>>, %arg7: memref<8x128xf32, #tpu.memory_space<vmem>>) attributes {dimension_semantics = [#tpu.dimension_semantics<parallel>], iteration_bounds = array<i64: 1>, scalar_prefetch = 0 : i64, scratch_operands = 0 : i64, tpu.core_type = #tpu.core_type<tc>, window_params = [{transform_indices = @transform_0, window_bounds = array<i64: 8, 128>}, {pipeline_mode = #tpu.pipeline_mode<synchronous>, transform_indices = @transform_1, window_bounds = array<i64: 128, 128>}, {pipeline_mode = #tpu.pipeline_mode<synchronous>, transform_indices = @transform_2, window_bounds = array<i64: 128, 128>}, {pipeline_mode = #tpu.pipeline_mode<synchronous>, transform_indices = @transform_3, window_bounds = array<i64: 128, 128>}, {pipeline_mode = #tpu.pipeline_mode<synchronous>, transform_indices = @transform_4, window_bounds = array<i64: 128, 128>}, {pipeline_mode = #tpu.pipeline_mode<synchronous>, transform_indices = @transform_5, window_bounds = array<i64: 4, 128>}, {transform_indices = @transform_6, window_bounds = array<i64: 8, 128>}]} {
    %c0 = arith.constant 0 : index
    %c0_0 = arith.constant 0 : index
    %0 = vector.load %arg6[%c0, %c0_0] : memref<4x128xf32, #tpu.memory_space<vmem>>, vector<4x128xf32>
    %c0_1 = arith.constant 0 : index
    %c0_2 = arith.constant 0 : index
    %1 = vector.load %arg1[%c0_1, %c0_2] : memref<8x128xbf16, #tpu.memory_space<vmem>>, vector<8x128xbf16>
    %c0_3 = arith.constant 0 : index
    %c0_4 = arith.constant 0 : index
    %2 = vector.load %arg2[%c0_3, %c0_4] : memref<128x128xbf16, #tpu.memory_space<vmem>>, vector<128x128xbf16>
    %cst = arith.constant dense<0.000000e+00> : vector<8x128xf32>
    %3 = tpu.matmul %1, %2, %cst {dimension_numbers = #tpu.dot_dimension_numbers<[1], [0], [0], [1], [0, 0, 1, 1], [], []>} : vector<8x128xbf16>, vector<128x128xbf16>, vector<8x128xf32> -> vector<8x128xf32>
    %4 = vector.extract_strided_slice %0 {offsets = [0, 0], sizes = [1, 128], strides = [1, 1]} : vector<4x128xf32> to vector<1x128xf32>
    %5 = vector.broadcast %4 : vector<1x128xf32> to vector<8x128xf32>
    %6 = arith.addf %3, %5 : vector<8x128xf32>
    %cst_5 = arith.constant 0.000000e+00 : f32
    %7 = vector.broadcast %cst_5 : f32 to vector<8x128xf32>
    %8 = arith.maximumf %6, %7 : vector<8x128xf32>
    %9 = arith.truncf %8 : vector<8x128xf32> to vector<8x128xbf16>
    %c0_6 = arith.constant 0 : index
    %c0_7 = arith.constant 0 : index
    %10 = vector.load %arg3[%c0_6, %c0_7] : memref<128x128xbf16, #tpu.memory_space<vmem>>, vector<128x128xbf16>
    %cst_8 = arith.constant dense<0.000000e+00> : vector<8x128xf32>
    %11 = tpu.matmul %9, %10, %cst_8 {dimension_numbers = #tpu.dot_dimension_numbers<[1], [0], [0], [1], [0, 0, 1, 1], [], []>} : vector<8x128xbf16>, vector<128x128xbf16>, vector<8x128xf32> -> vector<8x128xf32>
    %12 = vector.extract_strided_slice %0 {offsets = [1, 0], sizes = [1, 128], strides = [1, 1]} : vector<4x128xf32> to vector<1x128xf32>
    %13 = vector.broadcast %12 : vector<1x128xf32> to vector<8x128xf32>
    %14 = arith.addf %11, %13 : vector<8x128xf32>
    %cst_9 = arith.constant 0.000000e+00 : f32
    %15 = vector.broadcast %cst_9 : f32 to vector<8x128xf32>
    %16 = arith.maximumf %14, %15 : vector<8x128xf32>
    %17 = arith.truncf %16 : vector<8x128xf32> to vector<8x128xbf16>
    %c0_10 = arith.constant 0 : index
    %c0_11 = arith.constant 0 : index
    %18 = vector.load %arg4[%c0_10, %c0_11] : memref<128x128xbf16, #tpu.memory_space<vmem>>, vector<128x128xbf16>
    %cst_12 = arith.constant dense<0.000000e+00> : vector<8x128xf32>
    %19 = tpu.matmul %17, %18, %cst_12 {dimension_numbers = #tpu.dot_dimension_numbers<[1], [0], [0], [1], [0, 0, 1, 1], [], []>} : vector<8x128xbf16>, vector<128x128xbf16>, vector<8x128xf32> -> vector<8x128xf32>
    %20 = vector.extract_strided_slice %0 {offsets = [2, 0], sizes = [1, 128], strides = [1, 1]} : vector<4x128xf32> to vector<1x128xf32>
    %21 = vector.broadcast %20 : vector<1x128xf32> to vector<8x128xf32>
    %22 = arith.addf %19, %21 : vector<8x128xf32>
    %23 = arith.truncf %22 : vector<8x128xf32> to vector<8x128xbf16>
    %c0_13 = arith.constant 0 : index
    %c0_14 = arith.constant 0 : index
    %24 = vector.load %arg5[%c0_13, %c0_14] : memref<128x128xbf16, #tpu.memory_space<vmem>>, vector<128x128xbf16>
    %cst_15 = arith.constant dense<0.000000e+00> : vector<8x128xf32>
    %25 = tpu.matmul %23, %24, %cst_15 {dimension_numbers = #tpu.dot_dimension_numbers<[1], [0], [0], [1], [0, 0, 1, 1], [], []>} : vector<8x128xbf16>, vector<128x128xbf16>, vector<8x128xf32> -> vector<8x128xf32>
    %26 = vector.extract_strided_slice %0 {offsets = [3, 0], sizes = [1, 128], strides = [1, 1]} : vector<4x128xf32> to vector<1x128xf32>
    %27 = vector.broadcast %26 : vector<1x128xf32> to vector<8x128xf32>
    %28 = arith.addf %25, %27 : vector<8x128xf32>
    %c0_16 = arith.constant 0 : index
    %c0_17 = arith.constant 0 : index
    %29 = vector.load %arg7[%c0_16, %c0_17] : memref<8x128xf32, #tpu.memory_space<vmem>>, vector<8x128xf32>
    tpu.vector_store %arg7[%c0_16, %c0_17], %28 {strides = array<i32>} : memref<8x128xf32, #tpu.memory_space<vmem>>, vector<8x128xf32>,
    return
  }
  func.func @transform_0(%arg0: i32) -> (i32, i32) {
    %c0_i32 = arith.constant 0 : i32
    %c0_i32_0 = arith.constant 0 : i32
    return %arg0, %c0_i32 : i32, i32
  }
  func.func @transform_1(%arg0: i32) -> (i32, i32) {
    %c0_i32 = arith.constant 0 : i32
    %c0_i32_0 = arith.constant 0 : i32
    %c0_i32_1 = arith.constant 0 : i32
    return %c0_i32, %c0_i32_0 : i32, i32
  }
  func.func @transform_2(%arg0: i32) -> (i32, i32) {
    %c0_i32 = arith.constant 0 : i32
    %c0_i32_0 = arith.constant 0 : i32
    %c0_i32_1 = arith.constant 0 : i32
    return %c0_i32, %c0_i32_0 : i32, i32
  }
  func.func @transform_3(%arg0: i32) -> (i32, i32) {
    %c0_i32 = arith.constant 0 : i32
    %c0_i32_0 = arith.constant 0 : i32
    %c0_i32_1 = arith.constant 0 : i32
    return %c0_i32, %c0_i32_0 : i32, i32
  }
  func.func @transform_4(%arg0: i32) -> (i32, i32) {
    %c0_i32 = arith.constant 0 : i32
    %c0_i32_0 = arith.constant 0 : i32
    %c0_i32_1 = arith.constant 0 : i32
    return %c0_i32, %c0_i32_0 : i32, i32
  }
  func.func @transform_5(%arg0: i32) -> (i32, i32) {
    %c0_i32 = arith.constant 0 : i32
    %c0_i32_0 = arith.constant 0 : i32
    %c0_i32_1 = arith.constant 0 : i32
    return %c0_i32, %c0_i32_0 : i32, i32
  }
  func.func @transform_6(%arg0: i32) -> (i32, i32) {
    %c0_i32 = arith.constant 0 : i32
    %c0_i32_0 = arith.constant 0 : i32
    return %arg0, %c0_i32 : i32, i32
  }
}

</mosaic_0001>

<bundles_post_ra>
// kernel: tpu_custom_call.1
= control target key start
LH: loop header
LB: loop body
LE: loop exit
PB: predicated region body
PF: predicated region fallthrough
CT: control target
= control target key end

     0   :  { %11 = vsyncpa [#allocation3], 0  ;;  %s1050_s0 = inlined_call_operand.hbm [shape: bf16[8,128], index: 0, kind: input, shape index: {}]   ;;  %s1051_s1 = inlined_call_operand.hbm [shape: bf16[128,128], index: 1, kind: input, shape index: {}]   ;;  %s1052_s2 = inlined_call_operand.hbm [shape: bf16[128,128], index: 2, kind: input, shape index: {}]   ;;  %s1053_s3 = inlined_call_operand.hbm [shape: bf16[128,128], index: 3, kind: input, shape index: {}]   ;;  %s1054_s4 = inlined_call_operand.hbm [shape: bf16[128,128], index: 4, kind: input, shape index: {}]   ;;  %s1055_s5 = inlined_call_operand.vmem [shape: f32[4,128], index: 5, kind: input, shape index: {}]   ;;  %s1056_s6 = inlined_call_operand.hbm [shape: f32[8,128], index: 6, kind: output, shape index: {}]  }
   0x1   :  { %12 = vsyncpa [#allocation6], 0 }
   0x2   :  { %13 = vsyncpa [#allocation9], 0 }
   0x3   :  { %14 = vsyncpa [#allocation4], 0  ;;  %s878_s21 = smov [#allocation5]   ;;  %s738_s25 = scalar_lea.hbm %s1051_s1, 1024 }
   0x4   :  { %s30_s22 = sshll.u32 %s878_s21, 4  ;;  %p739_p0 = scmp.ne.s32.totalorder %s1051_s1, %s738_s25  ;;  %s31_s22 = int_to_ptr.vmem [resolvable:$true] %s30_s22 }
   0x5   :  { %p742_p1 = scmp.lt.u32.totalorder %s738_s25, %s1051_s1 }
   0x7   :  { %p744_p2 = pnand %p742_p1, %p739_p0 }
   0x9   :  { %747 = shalt.err (!%p744_p2)
}
   0xa   :  { %s748_s30 = scalar_lea.vmem %s31_s22, 1024  ;;  %p753_p4 = scmp.lt.s32.totalorder %s31_s22, %s31_s22 }
   0xb   :  { %p749_p3 = scmp.ne.s32.totalorder %s31_s22, %s748_s30  ;;  %p754_p5 = scmp.lt.s32.totalorder %s748_s30, %s748_s30 }
   0xd   :  { %p755_p6 = por %p754_p5, %p753_p4 }
   0xf   :  { %p756_p7 = pnand %p755_p6, %p749_p3 }
  0x11   :  { %759 = shalt.err (!%p756_p7)
}
  0x12   :  { %s879_s7 = smov 64   ;;  %s880_s8 = smov 4  }
  0x13   :  { %36 = dma.hbm_to_vmem [thread:$0]  %s1051_s1, 1024, %s31_s22, [#allocation6], %s879_s7, %s879_s7, %s880_s8  }
  0x14   :  { %s881_s11 = smov [#allocation8]   ;;  %s882_s13 = smov [#allocation2]  }
  0x15   :  { %s54_s12 = sshll.u32 %s881_s11, 4  ;;  %s21_s14 = sshll.u32 %s882_s13, 4  ;;  %s55_s12 = int_to_ptr.vmem [resolvable:$true] %s54_s12  ;;  %s22_s14 = int_to_ptr.vmem [resolvable:$true] %s21_s14 }
  0x16   :  { %s760_s17 = scalar_lea.hbm %s1053_s3, 1024 }
  0x17   :  { %p761_p8 = scmp.ne.s32.totalorder %s1053_s3, %s760_s17  ;;  %p764_p9 = scmp.lt.u32.totalorder %s760_s17, %s1053_s3 }
  0x19   :  { %p766_p10 = pnand %p764_p9, %p761_p8 }
  0x1b   :  { %769 = shalt.err (!%p766_p10)
}
  0x1c   :  { %s770_s1 = scalar_lea.vmem %s55_s12, 1024  ;;  %p775_p12 = scmp.lt.s32.totalorder %s55_s12, %s55_s12 }
  0x1d   :  { %p771_p11 = scmp.ne.s32.totalorder %s55_s12, %s770_s1  ;;  %p776_p13 = scmp.lt.s32.totalorder %s770_s1, %s770_s1 }
  0x1f   :  { %p777_p0 = por %p776_p13, %p775_p12 }
  0x21   :  { %p778_p1 = pnand %p777_p0, %p771_p11 }
  0x23   :  { %781 = shalt.err (!%p778_p1)
}
  0x24   :  { %60 = dma.hbm_to_vmem [thread:$0]  %s1053_s3, 1024, %s55_s12, [#allocation9], %s879_s7, %s879_s7, %s880_s8  }
  0x25   :  { %s782_s26 = scalar_lea.hbm %s1050_s0, 64 }
  0x26   :  { %p783_p2 = scmp.ne.s32.totalorder %s1050_s0, %s782_s26  ;;  %p786_p3 = scmp.lt.u32.totalorder %s782_s26, %s1050_s0 }
  0x28   :  { %p788_p4 = pnand %p786_p3, %p783_p2 }
  0x2a   :  { %791 = shalt.err (!%p788_p4)
}
  0x2b   :  { %s792_s9 = scalar_lea.vmem %s22_s14, 64  ;;  %p797_p6 = scmp.lt.s32.totalorder %s22_s14, %s22_s14 }
  0x2c   :  { %p793_p5 = scmp.ne.s32.totalorder %s22_s14, %s792_s9  ;;  %p798_p7 = scmp.lt.s32.totalorder %s792_s9, %s792_s9 }
  0x2e   :  { %p799_p8 = por %p798_p7, %p797_p6 }
  0x30   :  { %p800_p9 = pnand %p799_p8, %p793_p5 }
  0x32   :  { %803 = shalt.err (!%p800_p9)
}
  0x33   :  { %24 = dma.hbm_to_vmem [thread:$0]  %s1050_s0, 64, %s22_s14, [#allocation3]  }
  0x34   :  { %s883_s11 = smov [#allocation7]   ;;  %s884_s13 = smov [#allocation10]  }
  0x35   :  { %s42_s12 = sshll.u32 %s883_s11, 4  ;;  %s66_s15 = sshll.u32 %s884_s13, 4  ;;  %s43_s12 = int_to_ptr.vmem [resolvable:$true] %s42_s12  ;;  %s67_s15 = int_to_ptr.vmem [resolvable:$true] %s66_s15 }
  0x36   :  { %s804_s18 = scalar_lea.hbm %s1052_s2, 1024 }
  0x37   :  { %p805_p10 = scmp.ne.s32.totalorder %s1052_s2, %s804_s18  ;;  %p808_p11 = scmp.lt.u32.totalorder %s804_s18, %s1052_s2 }
  0x39   :  { %p810_p12 = pnand %p808_p11, %p805_p10 }
  0x3b   :  { %813 = shalt.err (!%p810_p12)
}
  0x3c   :  { %s814_s0 = scalar_lea.vmem %s43_s12, 1024  ;;  %p819_p0 = scmp.lt.s32.totalorder %s43_s12, %s43_s12 }
  0x3d   :  { %p815_p13 = scmp.ne.s32.totalorder %s43_s12, %s814_s0  ;;  %p820_p1 = scmp.lt.s32.totalorder %s814_s0, %s814_s0 }
  0x3f   :  { %p821_p2 = por %p820_p1, %p819_p0 }
  0x41   :  { %p822_p3 = pnand %p821_p2, %p815_p13 }
  0x43   :  { %825 = shalt.err (!%p822_p3)
}
  0x44   :  { %48 = dma.hbm_to_vmem [thread:$0]  %s1052_s2, 1024, %s43_s12, [#allocation6], %s879_s7, %s879_s7, %s880_s8  }
  0x45   :  { %s826_s25 = scalar_lea.hbm %s1054_s4, 1024 }
  0x46   :  { %p827_p4 = scmp.ne.s32.totalorder %s1054_s4, %s826_s25  ;;  %p830_p5 = scmp.lt.u32.totalorder %s826_s25, %s1054_s4 }
  0x48   :  { %p832_p6 = pnand %p830_p5, %p827_p4 }
  0x4a   :  { %835 = shalt.err (!%p832_p6)
}
  0x4b   :  { %s836_s30 = scalar_lea.vmem %s67_s15, 1024  ;;  %p841_p8 = scmp.lt.s32.totalorder %s67_s15, %s67_s15 }
  0x4c   :  { %p837_p7 = scmp.ne.s32.totalorder %s67_s15, %s836_s30  ;;  %p842_p9 = scmp.lt.s32.totalorder %s836_s30, %s836_s30 }
  0x4e   :  { %p843_p10 = por %p842_p9, %p841_p8 }
  0x50   :  { %p844_p11 = pnand %p843_p10, %p837_p7 }
  0x52   :  { %847 = shalt.err (!%p844_p11)
}
  0x53   :  { %72 = dma.hbm_to_vmem [thread:$0]  %s1054_s4, 1024, %s67_s15, [#allocation9], %s879_s7, %s879_s7, %s880_s8  }
  0x54   :  { %870 = dma.done.wait [#allocation3], 64  }
  0x55   :  { %871 = vsyncadd [#allocation3], 4294967232 }
  0x56   :  { %872 = dma.done.wait [#allocation6], 2048  }
  0x57   :  { %873 = vsyncadd [#allocation6], 4294965248 }
  0x58   :  { %874 = dma.done.wait [#allocation9], 2048  }
  0x59   :  { %875 = vsyncadd [#allocation9], 4294965248  ;;  %v885_v0 = vmov 0.0   ;;  %vm886_vm0 = vmmov 0   ;;  %v706_v1 = vld [vmem:[#allocation5] sm:$0xff]   ;;  %v707_v2 = vld [vmem:[#allocation5 + $0x8] sm:$0xff]   ;;  %v109_v24 = vlaneseq }
  0x5a   :  { %616 = vmatprep.subr.bf16.mxu0 %v885_v0  ;;  %632 = vmatprep.mubr.msk.bf16.mxu0 %vm886_vm0, %v885_v0  ;;  %v708_v3 = vld [vmem:[#allocation5 + $0x10] sm:$0xff]   ;;  %v714_v4 = vld [vmem:[#allocation7] sm:$0xff]   ;;  %v709_v5 = vld [vmem:[#allocation5 + $0x18] sm:$0xff]  }
  0x5b   :  { %636 = vmatprep.subr.bf16.mxu1 %v885_v0  ;;  %652 = vmatprep.mubr.msk.bf16.mxu1 %vm886_vm0, %v885_v0  ;;  %v715_v6 = vld [vmem:[#allocation7 + $0x8] sm:$0xff]   ;;  %v710_v7 = vld [vmem:[#allocation5 + $0x20] sm:$0xff]   ;;  %v716_v8 = vld [vmem:[#allocation7 + $0x10] sm:$0xff]   ;;  %v110_v25 = vshrl.u32 %v109_v24, 7 }
  0x5c   :  { %617 = vmatpush3.bf16.msra.mxu0 %v706_v1  ;;  %637 = vmatpush3.bf16.msra.mxu1 %v714_v4  ;;  %v711_v9 = vld [vmem:[#allocation5 + $0x28] sm:$0xff]   ;;  %v717_v10 = vld [vmem:[#allocation7 + $0x18] sm:$0xff]   ;;  %v712_v11 = vld [vmem:[#allocation5 + $0x30] sm:$0xff]  }
  0x5d   :  { %618 = vmatprep.subr.bf16.mxu0 %v885_v0  ;;  %638 = vmatprep.subr.bf16.mxu1 %v885_v0  ;;  %v718_v12 = vld [vmem:[#allocation7 + $0x20] sm:$0xff]   ;;  %v713_v13 = vld [vmem:[#allocation5 + $0x38] sm:$0xff]   ;;  %v719_v14 = vld [vmem:[#allocation7 + $0x28] sm:$0xff]   ;;  %v111_v26 = vsub.s32 0, %v110_v25  ;;  %v221_v45 = vsub.s32 1, %v110_v25  ;;  %v331_v55 = vsub.s32 2, %v110_v25 }
  0x5e   :  { %v92_v15 = vld [vmem:[#allocation2] sm:$0xf]  ;;  %v720_v16 = vld [vmem:[#allocation7 + $0x30] sm:$0xff]   ;;  %v722_v18 = vld [vmem:[#allocation8] sm:$0xff]   ;;  %v440_v63 = vsub.s32 3, %v110_v25 }
  0x5f   :  { %v721_v17 = vld [vmem:[#allocation7 + $0x38] sm:$0xff]   ;;  %v723_v19 = vld [vmem:[#allocation8 + $0x8] sm:$0xff]   ;;  %v724_v20 = vld [vmem:[#allocation8 + $0x10] sm:$0xff]  }
  0x60   :  { %619 = vmatpush3.bf16.msra.mxu0 %v707_v2  ;;  %639 = vmatpush3.bf16.msra.mxu1 %v715_v6  ;;  %v725_v21 = vld [vmem:[#allocation8 + $0x18] sm:$0xff]   ;;  %v726_v22 = vld [vmem:[#allocation8 + $0x20] sm:$0xff]   ;;  %v727_v23 = vld [vmem:[#allocation8 + $0x28] sm:$0xff]  }
  0x61   :  { %620 = vmatprep.subr.bf16.mxu0 %v885_v0  ;;  %640 = vmatprep.subr.bf16.mxu1 %v885_v0  ;;  %v91_v27 = vld [vmem:[%s1055_s5] sm:$0xf]  ;;  %v728_v36 = vld [vmem:[#allocation8 + $0x30] sm:$0xff]   ;;  %v730_v38 = vld [vmem:[#allocation10] sm:$0xff]   ;;  %s887_s5 = smov [#allocation11]  }
  0x62   :  { %v112_v28 = vrot.slane %v91_v27, %v111_v26  ;;  %v729_v37 = vld [vmem:[#allocation8 + $0x38] sm:$0xff]   ;;  %v731_v39 = vld [vmem:[#allocation10 + $0x8] sm:$0xff]   ;;  %v732_v40 = vld [vmem:[#allocation10 + $0x10] sm:$0xff]   ;;  %v222_v46 = vrot.slane %v91_v27, %v221_v45  ;;  %v332_v56 = vrot.slane %v91_v27, %v331_v55  ;;  %s537_s8 = sshll.u32 %s887_s5, 4  ;;  %s538_s8 = int_to_ptr.vmem [resolvable:$true] %s537_s8 }
  0x63   :  { %v733_v41 = vld [vmem:[#allocation10 + $0x18] sm:$0xff]   ;;  %v734_v42 = vld [vmem:[#allocation10 + $0x20] sm:$0xff]   ;;  %v735_v43 = vld [vmem:[#allocation10 + $0x28] sm:$0xff]   ;;  %s848_s3 = scalar_lea.vmem %s538_s8, 128  ;;  %p853_p13 = scmp.lt.s32.totalorder %s538_s8, %s538_s8 }
  0x64   :  { %621 = vmatpush3.bf16.msra.mxu0 %v708_v3  ;;  %641 = vmatpush3.bf16.msra.mxu1 %v716_v8  ;;  %v736_v44 = vld [vmem:[#allocation10 + $0x30] sm:$0xff]   ;;  %v737_v54 = vld [vmem:[#allocation10 + $0x38] sm:$0xff]   ;;  %p849_p12 = scmp.ne.s32.totalorder %s538_s8, %s848_s3  ;;  %p854_p0 = scmp.lt.s32.totalorder %s848_s3, %s848_s3 }
  0x65   :  { %622 = vmatprep.subr.bf16.mxu0 %v885_v0  ;;  %642 = vmatprep.subr.bf16.mxu1 %v885_v0 }
  0x66   :  { %p855_p1 = por %p854_p0, %p853_p13 }
  0x68   :  { %623 = vmatpush3.bf16.msra.mxu0 %v709_v5  ;;  %643 = vmatpush3.bf16.msra.mxu1 %v717_v10  ;;  %p856_p2 = pnand %p855_p1, %p849_p12 }
  0x69   :  { %624 = vmatprep.subr.bf16.mxu0 %v885_v0  ;;  %644 = vmatprep.subr.bf16.mxu1 %v885_v0 }
  0x6c   :  { %625 = vmatpush3.bf16.msra.mxu0 %v710_v7  ;;  %645 = vmatpush3.bf16.msra.mxu1 %v718_v12 }
  0x6d   :  { %626 = vmatprep.subr.bf16.mxu0 %v885_v0  ;;  %646 = vmatprep.subr.bf16.mxu1 %v885_v0 }
  0x70   :  { %627 = vmatpush3.bf16.msra.mxu0 %v711_v9  ;;  %647 = vmatpush3.bf16.msra.mxu1 %v719_v14 }
  0x71   :  { %628 = vmatprep.subr.bf16.mxu0 %v885_v0  ;;  %648 = vmatprep.subr.bf16.mxu1 %v885_v0 }
  0x74   :  { %629 = vmatpush3.bf16.msra.mxu0 %v712_v11  ;;  %649 = vmatpush3.bf16.msra.mxu1 %v720_v16 }
  0x75   :  { %630 = vmatprep.subr.bf16.mxu0 %v885_v0  ;;  %650 = vmatprep.subr.bf16.mxu1 %v885_v0 }
  0x78   :  { %631 = vmatpush3.bf16.msra.mxu0 %v713_v13  ;;  %651 = vmatpush3.bf16.msra.mxu1 %v721_v17 }
  0x79   :  { %656 = vmatprep.subr.bf16.mxu0 %v885_v0  ;;  %676 = vmatprep.subr.bf16.mxu1 %v885_v0 }
  0x7b   :  { %633 = vmatmul.mubr.bf16.vlgmr.msra.gmra.mrb[0].mxu0 %v92_v15 }
  0x7c   :  { %672 = vmatprep.mubr.msk.bf16.mxu0 %vm886_vm0, %v885_v0  ;;  %657 = vmatpush3.bf16.msra.mxu0 %v722_v18 }
  0x7d   :  { %658 = vmatprep.subr.bf16.mxu0 %v885_v0 }
  0x80   :  { %659 = vmatpush3.bf16.msra.mxu0 %v723_v19 }
  0x81   :  { %660 = vmatprep.subr.bf16.mxu0 %v885_v0 }
  0x84   :  { %661 = vmatpush3.bf16.msra.mxu0 %v724_v20 }
  0x85   :  { %662 = vmatprep.subr.bf16.mxu0 %v885_v0 }
  0x88   :  { %663 = vmatpush3.bf16.msra.mxu0 %v725_v21 }
  0x89   :  { %664 = vmatprep.subr.bf16.mxu0 %v885_v0 }
  0x8c   :  { %665 = vmatpush3.bf16.msra.mxu0 %v726_v22 }
  0x8d   :  { %666 = vmatprep.subr.bf16.mxu0 %v885_v0 }
  0x90   :  { %667 = vmatpush3.bf16.msra.mxu0 %v727_v23 }
  0x91   :  { %668 = vmatprep.subr.bf16.mxu0 %v885_v0 }
  0x94   :  { %669 = vmatpush3.bf16.msra.mxu0 %v728_v36 }
  0x95   :  { %670 = vmatprep.subr.bf16.mxu0 %v885_v0 }
  0x98   :  { %671 = vmatpush3.bf16.msra.mxu0 %v729_v37 }
 0x14e   :  { %v195_v29 = vpop.f32.mrb[0].mxu0 }
 0x14f   :  { %v196_v30 = vadd.f32 %v195_v29, %v112_v28  ;;  %v634_v31 = vpop.f32.mrb[1].mxu0 }
 0x150   :  { %v198_v32 = vpop.f32.mrb[2].mxu0 }
 0x151   :  { %v201_v33 = vmax.f32 %v196_v30, 0.0  ;;  %v635_v34 = vpop.f32.mrb[3].mxu0 }
 0x153   :  { %v202_v35 = vpack.c.bf16 %v201_v33, %v201_v33 }
 0x155   :  { %653 = vmatmul.mubr.bf16.vlgmr.msra.gmra.mrb[0].mxu1 %v202_v35 }
 0x156   :  { %692 = vmatprep.mubr.msk.bf16.mxu1 %vm886_vm0, %v885_v0  ;;  %677 = vmatpush3.bf16.msra.mxu1 %v730_v38 }
 0x157   :  { %678 = vmatprep.subr.bf16.mxu1 %v885_v0 }
 0x15a   :  { %679 = vmatpush3.bf16.msra.mxu1 %v731_v39 }
 0x15b   :  { %680 = vmatprep.subr.bf16.mxu1 %v885_v0 }
 0x15e   :  { %681 = vmatpush3.bf16.msra.mxu1 %v732_v40 }
 0x15f   :  { %682 = vmatprep.subr.bf16.mxu1 %v885_v0 }
 0x162   :  { %683 = vmatpush3.bf16.msra.mxu1 %v733_v41 }
 0x163   :  { %684 = vmatprep.subr.bf16.mxu1 %v885_v0 }
 0x166   :  { %685 = vmatpush3.bf16.msra.mxu1 %v734_v42 }
 0x167   :  { %686 = vmatprep.subr.bf16.mxu1 %v885_v0 }
 0x16a   :  { %687 = vmatpush3.bf16.msra.mxu1 %v735_v43 }
 0x16b   :  { %688 = vmatprep.subr.bf16.mxu1 %v885_v0 }
 0x16e   :  { %689 = vmatpush3.bf16.msra.mxu1 %v736_v44 }
 0x16f   :  { %690 = vmatprep.subr.bf16.mxu1 %v885_v0  ;;  %v441_v0 = vrot.slane %v91_v27, %v440_v63 }
 0x172   :  { %691 = vmatpush3.bf16.msra.mxu1 %v737_v54 }
 0x228   :  { %v305_v47 = vpop.f32.mrb[0].mxu1 }
 0x229   :  { %v306_v48 = vadd.f32 %v305_v47, %v222_v46  ;;  %v654_v49 = vpop.f32.mrb[1].mxu1 }
 0x22a   :  { %v308_v50 = vpop.f32.mrb[2].mxu1 }
 0x22b   :  { %v311_v51 = vmax.f32 %v306_v48, 0.0  ;;  %v655_v52 = vpop.f32.mrb[3].mxu1 }
 0x22d   :  { %v312_v53 = vpack.c.bf16 %v311_v51, %v311_v51 }
 0x22f   :  { %673 = vmatmul.mubr.bf16.vlgmr.msra.gmra.mrb[4].mxu0 %v312_v53 }
 0x302   :  { %v415_v57 = vpop.f32.mrb[4].mxu0 }
 0x303   :  { %v416_v58 = vadd.f32 %v415_v57, %v332_v56  ;;  %v674_v59 = vpop.f32.mrb[5].mxu0 }
 0x304   :  { %v418_v60 = vpop.f32.mrb[6].mxu0 }
 0x305   :  { %v421_v61 = vpack.c.bf16 %v416_v58, %v416_v58  ;;  %v675_v62 = vpop.f32.mrb[7].mxu0 }
 0x307   :  { %693 = vmatmul.mubr.bf16.vlgmr.msra.gmra.mrb[4].mxu1 %v421_v61 }
 0x3da   :  { %v524_v1 = vpop.f32.mrb[4].mxu1 }
 0x3db   :  { %v525_v2 = vadd.f32 %v524_v1, %v441_v0  ;;  %v694_v3 = vpop.f32.mrb[5].mxu1 }
 0x3dc   :  { %v527_v4 = vpop.f32.mrb[6].mxu1 }
 0x3dd   :  { %530 = vst [vmem:[#allocation11] sm:$0xff] %v525_v2  ;;  %v695_v5 = vpop.f32.mrb[7].mxu1 }
 0x3de   :  { %859 = shalt.err (!%p856_p2)
}
 0x3df   :  { %s860_s12 = scalar_lea.hbm %s1056_s6, 128 }
 0x3e0   :  { %p861_p3 = scmp.ne.s32.totalorder %s1056_s6, %s860_s12  ;;  %p864_p4 = scmp.lt.u32.totalorder %s860_s12, %s1056_s6 }
 0x3e2   :  { %p866_p5 = pnand %p864_p4, %p861_p3 }
 0x3e4   :  { %869 = shalt.err (!%p866_p5)
}
 0x3e5   :  { %540 = dma.vmem_to_hbm [thread:$0]  %s538_s8, 128, %s1056_s6, [#allocation4]  }
 0x3e6   :  { %876 = dma.done.wait [#allocation4], 128  }
 0x3e7   :  { %877 = vsyncadd [#allocation4], 4294967168 }
 0x3e8   :  { %544 = vsyncpa [#allocation3], 1 }
 0x3e9   :  { %545 = vsyncpa [#allocation6], 1 }
 0x3ea   :  { %546 = vsyncpa [#allocation9], 1 }
 0x3eb   :  { %547 = vsyncpa [#allocation4], 1 }

// kernel: tpu_custom_call.1
= control target key start
LH: loop header
LB: loop body
LE: loop exit
PB: predicated region body
PF: predicated region fallthrough
CT: control target
= control target key end

     0   :  { %11 = vsyncpa [#allocation3], 0  ;;  %s1050_s0 = inlined_call_operand.hbm [shape: bf16[8,128], index: 0, kind: input, shape index: {}]   ;;  %s1051_s1 = inlined_call_operand.hbm [shape: bf16[128,128], index: 1, kind: input, shape index: {}]   ;;  %s1052_s2 = inlined_call_operand.hbm [shape: bf16[128,128], index: 2, kind: input, shape index: {}]   ;;  %s1053_s3 = inlined_call_operand.hbm [shape: bf16[128,128], index: 3, kind: input, shape index: {}]   ;;  %s1054_s4 = inlined_call_operand.hbm [shape: bf16[128,128], index: 4, kind: input, shape index: {}]   ;;  %s1055_s5 = inlined_call_operand.vmem [shape: f32[4,128], index: 5, kind: input, shape index: {}]   ;;  %s1056_s6 = inlined_call_operand.hbm [shape: f32[8,128], index: 6, kind: output, shape index: {}]  }
   0x1   :  { %12 = vsyncpa [#allocation6], 0 }
   0x2   :  { %13 = vsyncpa [#allocation9], 0 }
   0x3   :  { %14 = vsyncpa [#allocation4], 0  ;;  %s878_s21 = smov [#allocation5]   ;;  %s738_s25 = scalar_lea.hbm %s1051_s1, 1024 }
   0x4   :  { %s30_s22 = sshll.u32 %s878_s21, 4  ;;  %p739_p0 = scmp.ne.s32.totalorder %s1051_s1, %s738_s25  ;;  %s31_s22 = int_to_ptr.vmem [resolvable:$true] %s30_s22 }
   0x5   :  { %p742_p1 = scmp.lt.u32.totalorder %s738_s25, %s1051_s1 }
   0x7   :  { %p744_p2 = pnand %p742_p1, %p739_p0 }
   0x9   :  { %747 = shalt.err (!%p744_p2)
}
   0xa   :  { %s748_s30 = scalar_lea.vmem %s31_s22, 1024  ;;  %p753_p4 = scmp.lt.s32.totalorder %s31_s22, %s31_s22 }
   0xb   :  { %p749_p3 = scmp.ne.s32.totalorder %s31_s22, %s748_s30  ;;  %p754_p5 = scmp.lt.s32.totalorder %s748_s30, %s748_s30 }
   0xd   :  { %p755_p6 = por %p754_p5, %p753_p4 }
   0xf   :  { %p756_p7 = pnand %p755_p6, %p749_p3 }
  0x11   :  { %759 = shalt.err (!%p756_p7)
}
  0x12   :  { %s879_s7 = smov 64   ;;  %s880_s8 = smov 4  }
  0x13   :  { %36 = dma.hbm_to_vmem [thread:$0]  %s1051_s1, 1024, %s31_s22, [#allocation6], %s879_s7, %s879_s7, %s880_s8  }
  0x14   :  { %s881_s11 = smov [#allocation8]   ;;  %s882_s13 = smov [#allocation2]  }
  0x15   :  { %s54_s12 = sshll.u32 %s881_s11, 4  ;;  %s21_s14 = sshll.u32 %s882_s13, 4  ;;  %s55_s12 = int_to_ptr.vmem [resolvable:$true] %s54_s12  ;;  %s22_s14 = int_to_ptr.vmem [resolvable:$true] %s21_s14 }
  0x16   :  { %s760_s17 = scalar_lea.hbm %s1053_s3, 1024 }
  0x17   :  { %p761_p8 = scmp.ne.s32.totalorder %s1053_s3, %s760_s17  ;;  %p764_p9 = scmp.lt.u32.totalorder %s760_s17, %s1053_s3 }
  0x19   :  { %p766_p10 = pnand %p764_p9, %p761_p8 }
  0x1b   :  { %769 = shalt.err (!%p766_p10)
}
  0x1c   :  { %s770_s1 = scalar_lea.vmem %s55_s12, 1024  ;;  %p775_p12 = scmp.lt.s32.totalorder %s55_s12, %s55_s12 }
  0x1d   :  { %p771_p11 = scmp.ne.s32.totalorder %s55_s12, %s770_s1  ;;  %p776_p13 = scmp.lt.s32.totalorder %s770_s1, %s770_s1 }
  0x1f   :  { %p777_p0 = por %p776_p13, %p775_p12 }
  0x21   :  { %p778_p1 = pnand %p777_p0, %p771_p11 }
  0x23   :  { %781 = shalt.err (!%p778_p1)
}
  0x24   :  { %60 = dma.hbm_to_vmem [thread:$0]  %s1053_s3, 1024, %s55_s12, [#allocation9], %s879_s7, %s879_s7, %s880_s8  }
  0x25   :  { %s782_s26 = scalar_lea.hbm %s1050_s0, 64 }
  0x26   :  { %p783_p2 = scmp.ne.s32.totalorder %s1050_s0, %s782_s26  ;;  %p786_p3 = scmp.lt.u32.totalorder %s782_s26, %s1050_s0 }
  0x28   :  { %p788_p4 = pnand %p786_p3, %p783_p2 }
  0x2a   :  { %791 = shalt.err (!%p788_p4)
}
  0x2b   :  { %s792_s9 = scalar_lea.vmem %s22_s14, 64  ;;  %p797_p6 = scmp.lt.s32.totalorder %s22_s14, %s22_s14 }
  0x2c   :  { %p793_p5 = scmp.ne.s32.totalorder %s22_s14, %s792_s9  ;;  %p798_p7 = scmp.lt.s32.totalorder %s792_s9, %s792_s9 }
  0x2e   :  { %p799_p8 = por %p798_p7, %p797_p6 }
  0x30   :  { %p800_p9 = pnand %p799_p8, %p793_p5 }
  0x32   :  { %803 = shalt.err (!%p800_p9)
}
  0x33   :  { %24 = dma.hbm_to_vmem [thread:$0]  %s1050_s0, 64, %s22_s14, [#allocation3]  }
  0x34   :  { %s883_s11 = smov [#allocation7]   ;;  %s884_s13 = smov [#allocation10]  }
  0x35   :  { %s42_s12 = sshll.u32 %s883_s11, 4  ;;  %s66_s15 = sshll.u32 %s884_s13, 4  ;;  %s43_s12 = int_to_ptr.vmem [resolvable:$true] %s42_s12  ;;  %s67_s15 = int_to_ptr.vmem [resolvable:$true] %s66_s15 }
  0x36   :  { %s804_s18 = scalar_lea.hbm %s1052_s2, 1024 }
  0x37   :  { %p805_p10 = scmp.ne.s32.totalorder %s1052_s2, %s804_s18  ;;  %p808_p11 = scmp.lt.u32.totalorder %s804_s18, %s1052_s2 }
  0x39   :  { %p810_p12 = pnand %p808_p11, %p805_p10 }
  0x3b   :  { %813 = shalt.err (!%p810_p12)
}
  0x3c   :  { %s814_s0 = scalar_lea.vmem %s43_s12, 1024  ;;  %p819_p0 = scmp.lt.s32.totalorder %s43_s12, %s43_s12 }
  0x3d   :  { %p815_p13 = scmp.ne.s32.totalorder %s43_s12, %s814_s0  ;;  %p820_p1 = scmp.lt.s32.totalorder %s814_s0, %s814_s0 }
  0x3f   :  { %p821_p2 = por %p820_p1, %p819_p0 }
  0x41   :  { %p822_p3 = pnand %p821_p2, %p815_p13 }
  0x43   :  { %825 = shalt.err (!%p822_p3)
}
  0x44   :  { %48 = dma.hbm_to_vmem [thread:$0]  %s1052_s2, 1024, %s43_s12, [#allocation6], %s879_s7, %s879_s7, %s880_s8  }
  0x45   :  { %s826_s25 = scalar_lea.hbm %s1054_s4, 1024 }
  0x46   :  { %p827_p4 = scmp.ne.s32.totalorder %s1054_s4, %s826_s25  ;;  %p830_p5 = scmp.lt.u32.totalorder %s826_s25, %s1054_s4 }
  0x48   :  { %p832_p6 = pnand %p830_p5, %p827_p4 }
  0x4a   :  { %835 = shalt.err (!%p832_p6)
}
  0x4b   :  { %s836_s30 = scalar_lea.vmem %s67_s15, 1024  ;;  %p841_p8 = scmp.lt.s32.totalorder %s67_s15, %s67_s15 }
  0x4c   :  { %p837_p7 = scmp.ne.s32.totalorder %s67_s15, %s836_s30  ;;  %p842_p9 = scmp.lt.s32.totalorder %s836_s30, %s836_s30 }
  0x4e   :  { %p843_p10 = por %p842_p9, %p841_p8 }
  0x50   :  { %p844_p11 = pnand %p843_p10, %p837_p7 }
  0x52   :  { %847 = shalt.err (!%p844_p11)
}
  0x53   :  { %72 = dma.hbm_to_vmem [thread:$0]  %s1054_s4, 1024, %s67_s15, [#allocation9], %s879_s7, %s879_s7, %s880_s8  }
  0x54   :  { %870 = dma.done.wait [#allocation3], 64  }
  0x55   :  { %871 = vsyncadd [#allocation3], 4294967232 }
  0x56   :  { %872 = dma.done.wait [#allocation6], 2048  }
  0x57   :  { %873 = vsyncadd [#allocation6], 4294965248 }
  0x58   :  { %874 = dma.done.wait [#allocation9], 2048  }
  0x59   :  { %875 = vsyncadd [#allocation9], 4294965248  ;;  %v885_v0 = vmov 0.0   ;;  %vm886_vm0 = vmmov 0   ;;  %v706_v1 = vld [vmem:[#allocation5] sm:$0xff]   ;;  %v707_v2 = vld [vmem:[#allocation5 + $0x8] sm:$0xff]   ;;  %v109_v24 = vlaneseq }
  0x5a   :  { %616 = vmatprep.subr.bf16.mxu0 %v885_v0  ;;  %632 = vmatprep.mubr.msk.bf16.mxu0 %vm886_vm0, %v885_v0  ;;  %v708_v3 = vld [vmem:[#allocation5 + $0x10] sm:$0xff]   ;;  %v714_v4 = vld [vmem:[#allocation7] sm:$0xff]   ;;  %v709_v5 = vld [vmem:[#allocation5 + $0x18] sm:$0xff]  }
  0x5b   :  { %636 = vmatprep.subr.bf16.mxu1 %v885_v0  ;;  %652 = vmatprep.mubr.msk.bf16.mxu1 %vm886_vm0, %v885_v0  ;;  %v715_v6 = vld [vmem:[#allocation7 + $0x8] sm:$0xff]   ;;  %v710_v7 = vld [vmem:[#allocation5 + $0x20] sm:$0xff]   ;;  %v716_v8 = vld [vmem:[#allocation7 + $0x10] sm:$0xff]   ;;  %v110_v25 = vshrl.u32 %v109_v24, 7 }
  0x5c   :  { %617 = vmatpush3.bf16.msra.mxu0 %v706_v1  ;;  %637 = vmatpush3.bf16.msra.mxu1 %v714_v4  ;;  %v711_v9 = vld [vmem:[#allocation5 + $0x28] sm:$0xff]   ;;  %v717_v10 = vld [vmem:[#allocation7 + $0x18] sm:$0xff]   ;;  %v712_v11 = vld [vmem:[#allocation5 + $0x30] sm:$0xff]  }
  0x5d   :  { %618 = vmatprep.subr.bf16.mxu0 %v885_v0  ;;  %638 = vmatprep.subr.bf16.mxu1 %v885_v0  ;;  %v718_v12 = vld [vmem:[#allocation7 + $0x20] sm:$0xff]   ;;  %v713_v13 = vld [vmem:[#allocation5 + $0x38] sm:$0xff]   ;;  %v719_v14 = vld [vmem:[#allocation7 + $0x28] sm:$0xff]   ;;  %v111_v26 = vsub.s32 0, %v110_v25  ;;  %v221_v45 = vsub.s32 1, %v110_v25  ;;  %v331_v55 = vsub.s32 2, %v110_v25 }
  0x5e   :  { %v92_v15 = vld [vmem:[#allocation2] sm:$0xf]  ;;  %v720_v16 = vld [vmem:[#allocation7 + $0x30] sm:$0xff]   ;;  %v722_v18 = vld [vmem:[#allocation8] sm:$0xff]   ;;  %v440_v63 = vsub.s32 3, %v110_v25 }
  0x5f   :  { %v721_v17 = vld [vmem:[#allocation7 + $0x38] sm:$0xff]   ;;  %v723_v19 = vld [vmem:[#allocation8 + $0x8] sm:$0xff]   ;;  %v724_v20 = vld [vmem:[#allocation8 + $0x10] sm:$0xff]  }
  0x60   :  { %619 = vmatpush3.bf16.msra.mxu0 %v707_v2  ;;  %639 = vmatpush3.bf16.msra.mxu1 %v715_v6  ;;  %v725_v21 = vld [vmem:[#allocation8 + $0x18] sm:$0xff]   ;;  %v726_v22 = vld [vmem:[#allocation8 + $0x20] sm:$0xff]   ;;  %v727_v23 = vld [vmem:[#allocation8 + $0x28] sm:$0xff]  }
  0x61   :  { %620 = vmatprep.subr.bf16.mxu0 %v885_v0  ;;  %640 = vmatprep.subr.bf16.mxu1 %v885_v0  ;;  %v91_v27 = vld [vmem:[%s1055_s5] sm:$0xf]  ;;  %v728_v36 = vld [vmem:[#allocation8 + $0x30] sm:$0xff]   ;;  %v730_v38 = vld [vmem:[#allocation10] sm:$0xff]   ;;  %s887_s5 = smov [#allocation11]  }
  0x62   :  { %v112_v28 = vrot.slane %v91_v27, %v111_v26  ;;  %v729_v37 = vld [vmem:[#allocation8 + $0x38] sm:$0xff]   ;;  %v731_v39 = vld [vmem:[#allocation10 + $0x8] sm:$0xff]   ;;  %v732_v40 = vld [vmem:[#allocation10 + $0x10] sm:$0xff]   ;;  %v222_v46 = vrot.slane %v91_v27, %v221_v45  ;;  %v332_v56 = vrot.slane %v91_v27, %v331_v55  ;;  %s537_s8 = sshll.u32 %s887_s5, 4  ;;  %s538_s8 = int_to_ptr.vmem [resolvable:$true] %s537_s8 }
  0x63   :  { %v733_v41 = vld [vmem:[#allocation10 + $0x18] sm:$0xff]   ;;  %v734_v42 = vld [vmem:[#allocation10 + $0x20] sm:$0xff]   ;;  %v735_v43 = vld [vmem:[#allocation10 + $0x28] sm:$0xff]   ;;  %s848_s3 = scalar_lea.vmem %s538_s8, 128  ;;  %p853_p13 = scmp.lt.s32.totalorder %s538_s8, %s538_s8 }
  0x64   :  { %621 = vmatpush3.bf16.msra.mxu0 %v708_v3  ;;  %641 = vmatpush3.bf16.msra.mxu1 %v716_v8  ;;  %v736_v44 = vld [vmem:[#allocation10 + $0x30] sm:$0xff]   ;;  %v737_v54 = vld [vmem:[#allocation10 + $0x38] sm:$0xff]   ;;  %p849_p12 = scmp.ne.s32.totalorder %s538_s8, %s848_s3  ;;  %p854_p0 = scmp.lt.s32.totalorder %s848_s3, %s848_s3 }
  0x65   :  { %622 = vmatprep.subr.bf16.mxu0 %v885_v0  ;;  %642 = vmatprep.subr.bf16.mxu1 %v885_v0 }
  0x66   :  { %p855_p1 = por %p854_p0, %p853_p13 }
  0x68   :  { %623 = vmatpush3.bf16.msra.mxu0 %v709_v5  ;;  %643 = vmatpush3.bf16.msra.mxu1 %v717_v10  ;;  %p856_p2 = pnand %p855_p1, %p849_p12 }
  0x69   :  { %624 = vmatprep.subr.bf16.mxu0 %v885_v0  ;;  %644 = vmatprep.subr.bf16.mxu1 %v885_v0 }
  0x6c   :  { %625 = vmatpush3.bf16.msra.mxu0 %v710_v7  ;;  %645 = vmatpush3.bf16.msra.mxu1 %v718_v12 }
  0x6d   :  { %626 = vmatprep.subr.bf16.mxu0 %v885_v0  ;;  %646 = vmatprep.subr.bf16.mxu1 %v885_v0 }
  0x70   :  { %627 = vmatpush3.bf16.msra.mxu0 %v711_v9  ;;  %647 = vmatpush3.bf16.msra.mxu1 %v719_v14 }
  0x71   :  { %628 = vmatprep.subr.bf16.mxu0 %v885_v0  ;;  %648 = vmatprep.subr.bf16.mxu1 %v885_v0 }
  0x74   :  { %629 = vmatpush3.bf16.msra.mxu0 %v712_v11  ;;  %649 = vmatpush3.bf16.msra.mxu1 %v720_v16 }
  0x75   :  { %630 = vmatprep.subr.bf16.mxu0 %v885_v0  ;;  %650 = vmatprep.subr.bf16.mxu1 %v885_v0 }
  0x78   :  { %631 = vmatpush3.bf16.msra.mxu0 %v713_v13  ;;  %651 = vmatpush3.bf16.msra.mxu1 %v721_v17 }
  0x79   :  { %656 = vmatprep.subr.bf16.mxu0 %v885_v0  ;;  %676 = vmatprep.subr.bf16.mxu1 %v885_v0 }
  0x7b   :  { %633 = vmatmul.mubr.bf16.vlgmr.msra.gmra.mrb[0].mxu0 %v92_v15 }
  0x7c   :  { %672 = vmatprep.mubr.msk.bf16.mxu0 %vm886_vm0, %v885_v0  ;;  %657 = vmatpush3.bf16.msra.mxu0 %v722_v18 }
  0x7d   :  { %658 = vmatprep.subr.bf16.mxu0 %v885_v0 }
  0x80   :  { %659 = vmatpush3.bf16.msra.mxu0 %v723_v19 }
  0x81   :  { %660 = vmatprep.subr.bf16.mxu0 %v885_v0 }
  0x84   :  { %661 = vmatpush3.bf16.msra.mxu0 %v724_v20 }
  0x85   :  { %662 = vmatprep.subr.bf16.mxu0 %v885_v0 }
  0x88   :  { %663 = vmatpush3.bf16.msra.mxu0 %v725_v21 }
  0x89   :  { %664 = vmatprep.subr.bf16.mxu0 %v885_v0 }
  0x8c   :  { %665 = vmatpush3.bf16.msra.mxu0 %v726_v22 }
  0x8d   :  { %666 = vmatprep.subr.bf16.mxu0 %v885_v0 }
  0x90   :  { %667 = vmatpush3.bf16.msra.mxu0 %v727_v23 }
  0x91   :  { %668 = vmatprep.subr.bf16.mxu0 %v885_v0 }
  0x94   :  { %669 = vmatpush3.bf16.msra.mxu0 %v728_v36 }
  0x95   :  { %670 = vmatprep.subr.bf16.mxu0 %v885_v0 }
  0x98   :  { %671 = vmatpush3.bf16.msra.mxu0 %v729_v37 }
 0x14e   :  { %v195_v29 = vpop.f32.mrb[0].mxu0 }
 0x14f   :  { %v196_v30 = vadd.f32 %v195_v29, %v112_v28  ;;  %v634_v31 = vpop.f32.mrb[1].mxu0 }
 0x150   :  { %v198_v32 = vpop.f32.mrb[2].mxu0 }
 0x151   :  { %v201_v33 = vmax.f32 %v196_v30, 0.0  ;;  %v635_v34 = vpop.f32.mrb[3].mxu0 }
 0x153   :  { %v202_v35 = vpack.c.bf16 %v201_v33, %v201_v33 }
 0x155   :  { %653 = vmatmul.mubr.bf16.vlgmr.msra.gmra.mrb[0].mxu1 %v202_v35 }
 0x156   :  { %692 = vmatprep.mubr.msk.bf16.mxu1 %vm886_vm0, %v885_v0  ;;  %677 = vmatpush3.bf16.msra.mxu1 %v730_v38 }
 0x157   :  { %678 = vmatprep.subr.bf16.mxu1 %v885_v0 }
 0x15a   :  { %679 = vmatpush3.bf16.msra.mxu1 %v731_v39 }
 0x15b   :  { %680 = vmatprep.subr.bf16.mxu1 %v885_v0 }
 0x15e   :  { %681 = vmatpush3.bf16.msra.mxu1 %v732_v40 }
 0x15f   :  { %682 = vmatprep.subr.bf16.mxu1 %v885_v0 }
 0x162   :  { %683 = vmatpush3.bf16.msra.mxu1 %v733_v41 }
 0x163   :  { %684 = vmatprep.subr.bf16.mxu1 %v885_v0 }
 0x166   :  { %685 = vmatpush3.bf16.msra.mxu1 %v734_v42 }
 0x167   :  { %686 = vmatprep.subr.bf16.mxu1 %v885_v0 }
 0x16a   :  { %687 = vmatpush3.bf16.msra.mxu1 %v735_v43 }
 0x16b   :  { %688 = vmatprep.subr.bf16.mxu1 %v885_v0 }
 0x16e   :  { %689 = vmatpush3.bf16.msra.mxu1 %v736_v44 }
 0x16f   :  { %690 = vmatprep.subr.bf16.mxu1 %v885_v0  ;;  %v441_v0 = vrot.slane %v91_v27, %v440_v63 }
 0x172   :  { %691 = vmatpush3.bf16.msra.mxu1 %v737_v54 }
 0x228   :  { %v305_v47 = vpop.f32.mrb[0].mxu1 }
 0x229   :  { %v306_v48 = vadd.f32 %v305_v47, %v222_v46  ;;  %v654_v49 = vpop.f32.mrb[1].mxu1 }
 0x22a   :  { %v308_v50 = vpop.f32.mrb[2].mxu1 }
 0x22b   :  { %v311_v51 = vmax.f32 %v306_v48, 0.0  ;;  %v655_v52 = vpop.f32.mrb[3].mxu1 }
 0x22d   :  { %v312_v53 = vpack.c.bf16 %v311_v51, %v311_v51 }
 0x22f   :  { %673 = vmatmul.mubr.bf16.vlgmr.msra.gmra.mrb[4].mxu0 %v312_v53 }
 0x302   :  { %v415_v57 = vpop.f32.mrb[4].mxu0 }
 0x303   :  { %v416_v58 = vadd.f32 %v415_v57, %v332_v56  ;;  %v674_v59 = vpop.f32.mrb[5].mxu0 }
 0x304   :  { %v418_v60 = vpop.f32.mrb[6].mxu0 }
 0x305   :  { %v421_v61 = vpack.c.bf16 %v416_v58, %v416_v58  ;;  %v675_v62 = vpop.f32.mrb[7].mxu0 }
 0x307   :  { %693 = vmatmul.mubr.bf16.vlgmr.msra.gmra.mrb[4].mxu1 %v421_v61 }
 0x3da   :  { %v524_v1 = vpop.f32.mrb[4].mxu1 }
 0x3db   :  { %v525_v2 = vadd.f32 %v524_v1, %v441_v0  ;;  %v694_v3 = vpop.f32.mrb[5].mxu1 }
 0x3dc   :  { %v527_v4 = vpop.f32.mrb[6].mxu1 }
 0x3dd   :  { %530 = vst [vmem:[#allocation11] sm:$0xff] %v525_v2  ;;  %v695_v5 = vpop.f32.mrb[7].mxu1 }
 0x3de   :  { %859 = shalt.err (!%p856_p2)
}
 0x3df   :  { %s860_s12 = scalar_lea.hbm %s1056_s6, 128 }
 0x3e0   :  { %p861_p3 = scmp.ne.s32.totalorder %s1056_s6, %s860_s12  ;;  %p864_p4 = scmp.lt.u32.totalorder %s860_s12, %s1056_s6 }
 0x3e2   :  { %p866_p5 = pnand %p864_p4, %p861_p3 }
 0x3e4   :  { %869 = shalt.err (!%p866_p5)
}
 0x3e5   :  { %540 = dma.vmem_to_hbm [thread:$0]  %s538_s8, 128, %s1056_s6, [#allocation4]  }
 0x3e6   :  { %876 = dma.done.wait [#allocation4], 128  }
 0x3e7   :  { %877 = vsyncadd [#allocation4], 4294967168 }
 0x3e8   :  { %544 = vsyncpa [#allocation3], 1 }
 0x3e9   :  { %545 = vsyncpa [#allocation6], 1 }
 0x3ea   :  { %546 = vsyncpa [#allocation9], 1 }
 0x3eb   :  { %547 = vsyncpa [#allocation4], 1 }

</bundles_post_ra>
